<compile_context>
chip_gen: v6e
topology: v6e:2x2x1
jax: 0.10.0
libtpu: 0.0.40
codegen_flags: <defaults>
</compile_context>

<pallas_src>
import functools

import jax
import jax.numpy as jnp
from jax import lax
from jax.experimental import pallas as pl
from jax.experimental.pallas import tpu as pltpu

_LANE = 128
_SUBLANE = 8


# ---------------------------------------------------------------------------
# shared in-kernel helpers
# ---------------------------------------------------------------------------

def _fast_recip(x):
    # EUP vrcp (approx, nearly free in the EUP slot) + two Newton steps so the
    # result is f32-accurate regardless of the seed precision (cheap VPU ops
    # on per-row arrays only).
    r = pl.reciprocal(x, approx=True)
    r = r * (2.0 - x * r)
    r = r * (2.0 - x * r)
    return r


def _focal_weight(p_t, gamma):
    one_minus = 1.0 - p_t
    g_int = int(round(gamma))
    if abs(gamma - g_int) < 1e-12 and 0 <= g_int <= 16:
        # integer gamma: repeated multiply, no extra EUP transcendentals
        w = jnp.ones_like(one_minus)
        for _ in range(g_int):
            w = w * one_minus
        return w
    # non-integer gamma: clamp (p_t can exceed 1 by an ulp -> NaN in pow)
    return jnp.power(jnp.maximum(one_minus, 0.0), gamma)


def _accumulate(acc_ref, loss, gb, *, tile, valid, mask_from, needs_mask, axis):
    """Accumulate per-row losses; only the tail tile(s) pay for the mask."""
    if not needs_mask:
        acc_ref[...] += loss
        return

    @pl.when(gb >= mask_from)
    def _masked():
        pos = gb * tile + lax.broadcasted_iota(jnp.int32, loss.shape, axis)
        acc_ref[...] += jnp.where(pos < valid, loss, 0.0)

    @pl.when(gb < mask_from)
    def _unmasked():
        acc_ref[...] += loss


def _finalize(out_ref, acc_ref, i, n_inner):
    @pl.when(i == n_inner - 1)
    def _():
        out_ref[...] = jnp.reshape(jnp.sum(acc_ref[...]),
                                   (1, 1, 1)).astype(out_ref.dtype)


# ---------------------------------------------------------------------------
# kernels (one per layout)
# ---------------------------------------------------------------------------

def _focal_kernel_packed(preds_ref, labels_ref, alpha_ref, out_ref, acc_ref, *,
                         gamma, num_classes, rows_per_lane, tile, valid,
                         n_inner, mask_from, needs_mask):
    """Tiny-C path. Rows are packed class-major onto the 8 f32 sublanes:
    sublane c*R + r, lane g  <->  row g*R + r, class c  (R = 8 // C).
    Every [8, T] elementwise / EUP op is fully dense (no sublane padding
    waste); the per-row class reduction is a cyclic sublane roll by k*R."""
    p = pl.program_id(0)
    i = pl.program_id(1)
    gb = p * n_inner + i

    @pl.when(i == 0)
    def _init():
        acc_ref[...] = jnp.zeros_like(acc_ref)

    C = num_classes
    R = rows_per_lane
    x = preds_ref[...].astype(jnp.float32)            # [8, T] packed logits
    lab = labels_ref[...]                             # [R, T] int32
    alf = alpha_ref[...]                              # [8, 1] alpha[c] repeated R times

    # per-row max / exp / sum, fully dense (sublane rolls ride the XLU slot)
    m = x
    for k in range(1, C):
        m = jnp.maximum(m, pltpu.roll(x, shift=k * R, axis=0))
    z = jnp.exp(x - m)                                # the expensive op: zero waste
    s = z
    for k in range(1, C):
        s = s + pltpu.roll(z, shift=k * R, axis=0)

    tm = x.shape[1]
    z_t = jnp.zeros((R, tm), jnp.float32)
    x_t = jnp.zeros((R, tm), jnp.float32)
    a_t = jnp.zeros((R, tm), jnp.float32)
    for c in range(C):                                # C <= 4, unrolled
        hit = lab == c
        z_t = jnp.where(hit, z[c * R:(c + 1) * R, :], z_t)
        x_t = jnp.where(hit, x[c * R:(c + 1) * R, :], x_t)
        a_t = jnp.where(hit, alf[c * R:(c + 1) * R, :], a_t)
    m_r = m[0:R, :]
    s_r = s[0:R, :]

    logp_t = x_t - m_r - jnp.log(s_r)                 # log p_target
    p_t = z_t * _fast_recip(s_r)                      # p_target (no second exp)
    loss = -a_t * _focal_weight(p_t, gamma) * logp_t  # [R, T]

    _accumulate(acc_ref, loss, gb, tile=tile, valid=valid,
                mask_from=mask_from, needs_mask=needs_mask, axis=1)
    _finalize(out_ref, acc_ref, i, n_inner)


def _focal_kernel_csub(preds_ref, labels_ref, alpha_ref, out_ref, acc_ref, *,
                       gamma, tile, valid, n_inner, mask_from, needs_mask):
    """Small / medium C: classes on sublanes, rows on the 128-lane axis."""
    p = pl.program_id(0)
    i = pl.program_id(1)
    gb = p * n_inner + i

    @pl.when(i == 0)
    def _init():
        acc_ref[...] = jnp.zeros_like(acc_ref)

    x = preds_ref[...].astype(jnp.float32)            # [C, T]
    lab = labels_ref[...]                             # [1, T] int32
    c, tm = x.shape

    m = jnp.max(x, axis=0, keepdims=True)             # [1, T]
    z = jnp.exp(x - m)                                # [C, T]
    s = jnp.sum(z, axis=0, keepdims=True)             # [1, T]

    onehot = (lax.broadcasted_iota(jnp.int32, (c, tm), 0) == lab
              ).astype(jnp.float32)
    z_t = jnp.sum(onehot * z, axis=0, keepdims=True)
    x_t = jnp.sum(onehot * x, axis=0, keepdims=True)
    a_t = jnp.sum(onehot * alpha_ref[...], axis=0, keepdims=True)

    logp_t = x_t - m - jnp.log(s)
    p_t = z_t * _fast_recip(s)
    loss = -a_t * _focal_weight(p_t, gamma) * logp_t  # [1, T]

    _accumulate(acc_ref, loss, gb, tile=tile, valid=valid,
                mask_from=mask_from, needs_mask=needs_mask, axis=1)
    _finalize(out_ref, acc_ref, i, n_inner)


def _focal_kernel_clane(preds_ref, labels_ref, alpha_ref, out_ref, acc_ref, *,
                        gamma, tile, valid, n_inner, mask_from, needs_mask):
    """Large C (>= 128): natural [rows, C] layout (no wrapper transpose), the
    class reduction rides the lane axis (XLU slot, idle here)."""
    p = pl.program_id(0)
    i = pl.program_id(1)
    gb = p * n_inner + i

    @pl.when(i == 0)
    def _init():
        acc_ref[...] = jnp.zeros_like(acc_ref)

    x = preds_ref[...].astype(jnp.float32)            # [Tm, C]
    lab = labels_ref[...]                             # [Tm, 1] int32
    tm, c = x.shape

    m = jnp.max(x, axis=1, keepdims=True)             # [Tm, 1]
    z = jnp.exp(x - m)
    s = jnp.sum(z, axis=1, keepdims=True)

    onehot = (lax.broadcasted_iota(jnp.int32, (tm, c), 1) == lab
              ).astype(jnp.float32)
    z_t = jnp.sum(onehot * z, axis=1, keepdims=True)
    x_t = jnp.sum(onehot * x, axis=1, keepdims=True)
    a_t = jnp.sum(onehot * alpha_ref[...], axis=1, keepdims=True)

    logp_t = x_t - m - jnp.log(s)
    p_t = z_t * _fast_recip(s)
    loss = -a_t * _focal_weight(p_t, gamma) * logp_t  # [Tm, 1]

    _accumulate(acc_ref, loss, gb, tile=tile, valid=valid,
                mask_from=mask_from, needs_mask=needs_mask, axis=0)
    _finalize(out_ref, acc_ref, i, n_inner)


# ---------------------------------------------------------------------------
# wrapper-side sizing helpers
# ---------------------------------------------------------------------------

def _sub_pad(n, itemsize):
    # sublane tile: 8 for 4-byte, 16 for 2-byte, 32 for 1-byte dtypes
    t = _SUBLANE * max(1, 4 // max(int(itemsize), 1))
    return pl.cdiv(int(n), t) * t


def _lane_pad(n):
    return pl.cdiv(int(n), _LANE) * _LANE


def _physical_vmem_bytes():
    try:
        info = pltpu.get_tpu_info()
        v = int(getattr(info, "vmem_capacity_bytes", 0))
        if v > 0:
            return v
    except Exception:
        pass
    return 64 << 20   # conservative default (v7x per-TensorCore VMEM)


def _default_num_splits():
    # v7x has 2 TensorCores per chip (shard the row tiles across them);
    # on single-core chips an extra split only duplicates init/finalize work.
    try:
        kind = jax.devices()[0].device_kind.lower()
    except Exception:
        return 1
    return 2 if ("v7" in kind or "tpu7" in kind) else 1


def _fit_tile(candidate, units, granule):
    """Largest tile <= candidate that is a multiple of `granule` and never
    exceeds the array extent (the ragged tail is masked in-kernel)."""
    units = int(units)
    candidate = int(candidate)
    if units <= granule:
        return units                       # single full-extent block
    t = min(candidate, (units // granule) * granule)
    return max(granule, (t // granule) * granule)


# ---------------------------------------------------------------------------
# public entry point
# ---------------------------------------------------------------------------

def focal_loss(preds, labels, alpha, *, gamma=2.0, size_average=True,
               tile=None, num_splits=None):
    """Focal-loss forward. preds: [B, N, C] or [B, C] (any float dtype);
    labels: [B, N] or [B] integer class ids; alpha: [C] per-class weights."""
    num_classes = int(preds.shape[-1])
    itemsize = jnp.dtype(preds.dtype).itemsize
    preds2 = preds.reshape(-1, num_classes)            # [M, C], native dtype
    labels2 = labels.reshape(-1).astype(jnp.int32)     # [M]
    m_rows = int(preds2.shape[0])
    alpha_f = alpha.astype(jnp.float32).reshape(-1)

    if num_splits is None:
        num_splits = _default_num_splits()
    num_splits = max(1, int(num_splits))

    phys_vmem = _physical_vmem_bytes()
    budget = max(8 << 20, int(phys_vmem * 0.35))       # in-flight working set

    rows_per_lane = _SUBLANE // num_classes if num_classes < _SUBLANE else 0
    use_packed = (0 < num_classes < _SUBLANE
                  and _SUBLANE % num_classes == 0
                  and rows_per_lane > 0
                  and m_rows % rows_per_lane == 0)
    use_natural = (not use_packed) and num_classes >= _LANE

    if use_packed:
        # tiny C: pack R = 8//C rows per f32 sublane group (class-major) so
        # per-element exp / VPU work is fully sublane-dense.
        R = rows_per_lane
        G = m_rows // R
        preds_in = preds2.reshape(G, R, num_classes).transpose(2, 1, 0)
        preds_in = preds_in.reshape(num_classes * R, G)          # [8, G]
        labels_in = labels2.reshape(G, R).T                      # [R, G]
        alpha_in = jnp.repeat(alpha_f, R).reshape(num_classes * R, 1)
        units, granule, valid = G, _LANE, G
        bytes_per_unit = (2 * (_sub_pad(_SUBLANE, itemsize) * itemsize
                               + _sub_pad(R, 4) * 4)             # dbl-buffered inputs
                          + _SUBLANE * 4                         # acc
                          + 14 * _SUBLANE * 4)                   # f32 temporaries
        kernel_fn = functools.partial(_focal_kernel_packed,
                                      num_classes=num_classes, rows_per_lane=R)
        blocks = [((num_classes * R, None), "lane"),
                  ((R, None), "lane"),
                  ((num_classes * R, 1), "fixed")]
        acc_shape_fn = lambda t: (R, t)
        operands = (preds_in, labels_in, alpha_in)
    elif use_natural:
        # large C: keep the natural [M, C] layout (no wrapper transpose pass).
        preds_in = preds2                                        # [M, C]
        labels_in = labels2.reshape(m_rows, 1)                   # [M, 1]
        alpha_in = alpha_f.reshape(1, num_classes)
        units, granule, valid = m_rows, _SUBLANE, m_rows
        lane_c = _lane_pad(num_classes)
        bytes_per_unit = (2 * (lane_c * itemsize + _LANE * 4)
                          + _LANE * 4
                          + (4 * lane_c + 10 * _LANE) * 4)
        kernel_fn = _focal_kernel_clane
        blocks = [((None, num_classes), "sub"),
                  ((None, 1), "sub"),
                  ((1, num_classes), "fixed")]
        acc_shape_fn = lambda t: (t, 1)
        operands = (preds_in, labels_in, alpha_in)
    else:
        # small / medium C: classes on sublanes, rows lane-dense (one wrapper
        # transpose pass; no wrapper pad - ragged tail masked in-kernel).
        preds_in = preds2.T                                      # [C, M]
        labels_in = labels2.reshape(1, m_rows)                   # [1, M]
        alpha_in = alpha_f.reshape(num_classes, 1)
        units, granule, valid = m_rows, _LANE, m_rows
        sub_c = _sub_pad(num_classes, itemsize)
        bytes_per_unit = (2 * (sub_c * itemsize + _SUBLANE * 4)
                          + _SUBLANE * 4
                          + (4 * _sub_pad(num_classes, 4) + 10 * _SUBLANE) * 4)
        kernel_fn = _focal_kernel_csub
        blocks = [((num_classes, None), "lane"),
                  ((1, None), "lane"),
                  ((num_classes, 1), "fixed")]
        acc_shape_fn = lambda t: (1, t)
        operands = (preds_in, labels_in, alpha_in)

    # tile size from the padded + double-buffered VMEM footprint
    if tile is None:
        per_split = pl.cdiv(pl.cdiv(units, num_splits), granule) * granule
        hard_cap = (1 << 17) if granule == _LANE else 8192
        cand = max(granule,
                   min(budget // max(bytes_per_unit, 1), per_split, hard_cap))
        tile = _fit_tile(cand, units, granule)
    else:
        tile = _fit_tile(int(tile), units, granule)

    n_blocks = pl.cdiv(units, tile)
    num_splits = max(1, min(num_splits, n_blocks))
    n_total = pl.cdiv(n_blocks, num_splits) * num_splits
    n_inner = n_total // num_splits
    ragged = (units % tile) != 0
    mask_from = (n_blocks - 1) if ragged else n_blocks
    needs_mask = mask_from < n_total
    last_block = n_blocks - 1

    # Index maps: tail duplicates (when num_splits does not divide n_blocks)
    # are clamped onto the last valid block and zeroed in-kernel, so no block
    # ever starts out of range.
    def lane_map(pp, ii):
        return (0, jnp.minimum(pp * n_inner + ii, last_block))

    def sub_map(pp, ii):
        return (jnp.minimum(pp * n_inner + ii, last_block), 0)

    def fixed_map(pp, ii):
        return (0, 0)

    in_specs = []
    for shape, kind in blocks:
        if kind == "lane":
            in_specs.append(pl.BlockSpec((shape[0], int(tile)), lane_map))
        elif kind == "sub":
            in_specs.append(pl.BlockSpec((int(tile), shape[1]), sub_map))
        else:
            in_specs.append(pl.BlockSpec(shape, fixed_map))

    kernel = functools.partial(
        kernel_fn, gamma=float(gamma), tile=int(tile), valid=int(valid),
        n_inner=int(n_inner), mask_from=int(mask_from),
        needs_mask=bool(needs_mask))

    vmem_limit = int(min(int(phys_vmem * 0.8),
                         max(int(tile) * bytes_per_unit * 5 // 4 + (4 << 20),
                             32 << 20)))

    partials = pl.pallas_call(
        kernel,
        out_shape=jax.ShapeDtypeStruct((num_splits, 1, 1), jnp.float32),
        grid_spec=pltpu.PrefetchScalarGridSpec(
            num_scalar_prefetch=0,
            grid=(num_splits, n_inner),
            in_specs=in_specs,
            out_specs=pl.BlockSpec((1, 1, 1), lambda pp, ii: (pp, 0, 0)),
            scratch_shapes=[pltpu.VMEM(acc_shape_fn(int(tile)), jnp.float32)],
        ),
        compiler_params=pltpu.CompilerParams(
            dimension_semantics=("parallel", "arbitrary"),
            vmem_limit_bytes=vmem_limit),
    )(*operands)

    total = jnp.sum(partials)
    if size_average:
        total = total / m_rows
    return total


# ---------------------------------------------------------------------------
# pure-JAX reference and self-test
# ---------------------------------------------------------------------------

def focal_loss_reference(preds, labels, alpha, *, gamma=2.0, size_average=True):
    num_classes = preds.shape[-1]
    preds2 = preds.reshape(-1, num_classes).astype(jnp.float32)
    labels2 = labels.reshape(-1).astype(jnp.int32)
    logp = jax.nn.log_softmax(preds2, axis=1)
    logp_t = jnp.take_along_axis(logp, labels2[:, None], axis=1)[:, 0]
    p_t = jnp.exp(logp_t)
    alpha_t = alpha.astype(jnp.float32)[labels2]
    loss = -alpha_t * jnp.power(1.0 - p_t, gamma) * logp_t
    return jnp.mean(loss) if size_average else jnp.sum(loss)


def _make_alpha(alpha_scalar, num_classes):
    # matches the module __init__ for scalar alpha: alpha[0]=a, alpha[1:]=1-a
    return jnp.concatenate([
        jnp.array([alpha_scalar], dtype=jnp.float32),
        jnp.full((num_classes - 1,), 1.0 - alpha_scalar, dtype=jnp.float32),
    ])


if __name__ == "__main__":
    key = jax.random.PRNGKey(0)

    # 1) default module config (alpha=0.25, gamma=2, num_classes=2), f32.
    #    Exercises the packed tiny-C path.
    C1 = 2
    alpha1 = _make_alpha(0.25, C1)
    kp, kl, key = jax.random.split(key, 3)
    preds1 = jax.random.normal(kp, (2, 8, C1), dtype=jnp.float32)
    labels1 = jax.random.randint(kl, (2, 8), 0, C1, dtype=jnp.int32)
    out1 = jax.block_until_ready(
        focal_loss(preds1, labels1, alpha1, gamma=2.0, size_average=True))
    ref1 = focal_loss_reference(preds1, labels1, alpha1, gamma=2.0,
                                size_average=True)
    assert jnp.allclose(out1, ref1, atol=1e-5, rtol=1e-5), (out1, ref1)

    # 2) bf16, 3 classes, ragged row count, sum reduction, forced 2-way split.
    #    Exercises the classes-on-sublanes path + in-kernel tail mask.
    C2 = 3
    alpha2 = _make_alpha(0.25, C2)
    kp, kl, key = jax.random.split(key, 3)
    preds2_ = jax.random.normal(kp, (4, 100, C2),
                                dtype=jnp.float32).astype(jnp.bfloat16)
    labels2_ = jax.random.randint(kl, (4, 100), 0, C2, dtype=jnp.int32)
    out2 = jax.block_until_ready(
        focal_loss(preds2_, labels2_, alpha2, gamma=2.0,
                   size_average=False, num_splits=2))
    ref2 = focal_loss_reference(preds2_, labels2_, alpha2, gamma=2.0,
                                size_average=False)
    assert jnp.allclose(out2, ref2, atol=1e-2, rtol=1e-3), (out2, ref2)

    # 3) 128 classes, ragged rows: exercises the natural-layout (no wrapper
    #    transpose) large-C path with the class reduction on the lane axis.
    C3 = 128
    alpha3 = _make_alpha(0.25, C3)
    kp, kl, key = jax.random.split(key, 3)
    preds3 = jax.random.normal(kp, (2, 13, C3), dtype=jnp.float32)
    labels3 = jax.random.randint(kl, (2, 13), 0, C3, dtype=jnp.int32)
    out3 = jax.block_until_ready(
        focal_loss(preds3, labels3, alpha3, gamma=2.0, size_average=True))
    ref3 = focal_loss_reference(preds3, labels3, alpha3, gamma=2.0,
                                size_average=True)
    assert jnp.allclose(out3, ref3, atol=1e-5, rtol=1e-5), (out3, ref3)

    # 4) forced small tile + 2 splits so the grid has a clamped duplicate tail
    #    tile (n_blocks=3, n_total=4) - validates the clamp+mask machinery.
    C4 = 2
    alpha4 = _make_alpha(0.25, C4)
    kp, kl, key = jax.random.split(key, 3)
    preds4 = jax.random.normal(kp, (3, 512, C4), dtype=jnp.float32)
    labels4 = jax.random.randint(kl, (3, 512), 0, C4, dtype=jnp.int32)
    out4 = jax.block_until_ready(
        focal_loss(preds4, labels4, alpha4, gamma=2.0, size_average=True,
                   tile=128, num_splits=2))
    ref4 = focal_loss_reference(preds4, labels4, alpha4, gamma=2.0,
                                size_average=True)
    assert jnp.allclose(out4, ref4, atol=1e-5, rtol=1e-5), (out4, ref4)

    print("KERNEL_OK")
</pallas_src>

<mosaic_0001>
module attributes {stable_mosaic.version = 11 : i64} {
  func.func @_focal_kernel_packed(%arg0: i32, %arg1: i32, %arg2: memref<8x4xf32, #tpu.memory_space<vmem>>, %arg3: memref<4x4xi32, #tpu.memory_space<vmem>>, %arg4: memref<8x1xf32, #tpu.memory_space<vmem>>, %arg5: memref<1x1x1xf32, #tpu.memory_space<vmem>>, %arg6: memref<4x4xf32, #tpu.memory_space<vmem>>) attributes {dimension_semantics = [#tpu.dimension_semantics<parallel>, #tpu.dimension_semantics<arbitrary>], iteration_bounds = array<i64: 1, 1>, scalar_prefetch = 0 : i64, scratch_operands = 1 : i64, tpu.core_type = #tpu.core_type<tc>, window_params = [{transform_indices = @transform_0, window_bounds = array<i64: 8, 4>}, {transform_indices = @transform_1, window_bounds = array<i64: 4, 4>}, {pipeline_mode = #tpu.pipeline_mode<synchronous>, transform_indices = @transform_2, window_bounds = array<i64: 8, 1>}, {transform_indices = @transform_3, window_bounds = array<i64: 1, 1, 1>}]} {
    %c0_i32 = arith.constant 0 : i32
    %0 = arith.cmpi eq, %arg1, %c0_i32 : i32
    %1 = arith.extui %0 : i1 to i32
    %c0_i32_0 = arith.constant 0 : i32
    %2 = arith.cmpi ne, %1, %c0_i32_0 : i32
    scf.if %2 {
      %cst_21 = arith.constant 0.000000e+00 : f32
      %65 = vector.broadcast %cst_21 : f32 to vector<4x4xf32>
      %c0_22 = arith.constant 0 : index
      %c0_23 = arith.constant 0 : index
      %66 = vector.load %arg6[%c0_22, %c0_23] : memref<4x4xf32, #tpu.memory_space<vmem>>, vector<4x4xf32>
      tpu.vector_store %arg6[%c0_22, %c0_23], %65 {strides = array<i32>} : memref<4x4xf32, #tpu.memory_space<vmem>>, vector<4x4xf32>,
    } else {
    }
    %c0 = arith.constant 0 : index
    %c0_1 = arith.constant 0 : index
    %3 = vector.load %arg2[%c0, %c0_1] : memref<8x4xf32, #tpu.memory_space<vmem>>, vector<8x4xf32>
    %c0_2 = arith.constant 0 : index
    %c0_3 = arith.constant 0 : index
    %4 = vector.load %arg3[%c0_2, %c0_3] : memref<4x4xi32, #tpu.memory_space<vmem>>, vector<4x4xi32>
    %c0_4 = arith.constant 0 : index
    %c0_5 = arith.constant 0 : index
    %5 = vector.load %arg4[%c0_4, %c0_5] : memref<8x1xf32, #tpu.memory_space<vmem>>, vector<8x1xf32>
    %c4_i32 = arith.constant 4 : i32
    %6 = tpu.dynamic_rotate %3 by %c4_i32 dim 0 : vector<8x4xf32>, i32 -> vector<8x4xf32>
    %7 = arith.maximumf %3, %6 : vector<8x4xf32>
    %8 = arith.subf %3, %7 : vector<8x4xf32>
    %9 = math.exp %8 : vector<8x4xf32>
    %c4_i32_6 = arith.constant 4 : i32
    %10 = tpu.dynamic_rotate %9 by %c4_i32_6 dim 0 : vector<8x4xf32>, i32 -> vector<8x4xf32>
    %11 = arith.addf %9, %10 : vector<8x4xf32>
    %cst = arith.constant 0.000000e+00 : f32
    %12 = vector.broadcast %cst : f32 to vector<4x4xf32>
    %cst_7 = arith.constant 0.000000e+00 : f32
    %13 = vector.broadcast %cst_7 : f32 to vector<4x4xf32>
    %cst_8 = arith.constant 0.000000e+00 : f32
    %14 = vector.broadcast %cst_8 : f32 to vector<4x4xf32>
    %c0_i32_9 = arith.constant 0 : i32
    %15 = vector.broadcast %c0_i32_9 : i32 to vector<4x4xi32>
    %16 = arith.cmpi eq, %4, %15 : vector<4x4xi32>
    %17 = vector.extract_strided_slice %9 {offsets = [0, 0], sizes = [4, 4], strides = [1, 1]} : vector<8x4xf32> to vector<4x4xf32>
    %18 = arith.select %16, %17, %12 : vector<4x4xi1>, vector<4x4xf32>
    %19 = vector.extract_strided_slice %3 {offsets = [0, 0], sizes = [4, 4], strides = [1, 1]} : vector<8x4xf32> to vector<4x4xf32>
    %20 = arith.select %16, %19, %13 : vector<4x4xi1>, vector<4x4xf32>
    %21 = vector.extract_strided_slice %5 {offsets = [0, 0], sizes = [4, 1], strides = [1, 1]} : vector<8x1xf32> to vector<4x1xf32>
    %22 = vector.shape_cast %21 : vector<4x1xf32> to vector<4x1xf32>
    %23 = vector.broadcast %22 : vector<4x1xf32> to vector<4x4xf32>
    %24 = arith.select %16, %23, %14 : vector<4x4xi1>, vector<4x4xf32>
    %c1_i32 = arith.constant 1 : i32
    %25 = vector.broadcast %c1_i32 : i32 to vector<4x4xi32>
    %26 = arith.cmpi eq, %4, %25 : vector<4x4xi32>
    %27 = vector.extract_strided_slice %9 {offsets = [4, 0], sizes = [4, 4], strides = [1, 1]} : vector<8x4xf32> to vector<4x4xf32>
    %28 = arith.select %26, %27, %18 : vector<4x4xi1>, vector<4x4xf32>
    %29 = vector.extract_strided_slice %3 {offsets = [4, 0], sizes = [4, 4], strides = [1, 1]} : vector<8x4xf32> to vector<4x4xf32>
    %30 = arith.select %26, %29, %20 : vector<4x4xi1>, vector<4x4xf32>
    %31 = vector.extract_strided_slice %5 {offsets = [4, 0], sizes = [4, 1], strides = [1, 1]} : vector<8x1xf32> to vector<4x1xf32>
    %32 = vector.shape_cast %31 : vector<4x1xf32> to vector<4x1xf32>
    %33 = vector.broadcast %32 : vector<4x1xf32> to vector<4x4xf32>
    %34 = arith.select %26, %33, %24 : vector<4x4xi1>, vector<4x4xf32>
    %35 = vector.extract_strided_slice %7 {offsets = [0, 0], sizes = [4, 4], strides = [1, 1]} : vector<8x4xf32> to vector<4x4xf32>
    %36 = vector.extract_strided_slice %11 {offsets = [0, 0], sizes = [4, 4], strides = [1, 1]} : vector<8x4xf32> to vector<4x4xf32>
    %37 = arith.subf %30, %35 : vector<4x4xf32>
    %38 = math.log %36 : vector<4x4xf32>
    %39 = arith.subf %37, %38 : vector<4x4xf32>
    %40 = tpu.reciprocal %36 {approx = true} : vector<4x4xf32> -> vector<4x4xf32>
    %41 = arith.mulf %36, %40 : vector<4x4xf32>
    %cst_10 = arith.constant 2.000000e+00 : f32
    %42 = vector.broadcast %cst_10 : f32 to vector<4x4xf32>
    %43 = arith.subf %42, %41 : vector<4x4xf32>
    %44 = arith.mulf %40, %43 : vector<4x4xf32>
    %45 = arith.mulf %36, %44 : vector<4x4xf32>
    %cst_11 = arith.constant 2.000000e+00 : f32
    %46 = vector.broadcast %cst_11 : f32 to vector<4x4xf32>
    %47 = arith.subf %46, %45 : vector<4x4xf32>
    %48 = arith.mulf %44, %47 : vector<4x4xf32>
    %49 = arith.mulf %28, %48 : vector<4x4xf32>
    %cst_12 = arith.constant 0.000000e+00 : f32
    %50 = vector.broadcast %cst_12 : f32 to vector<4x4xf32>
    %51 = arith.subf %50, %34 : vector<4x4xf32>
    %cst_13 = arith.constant 1.000000e+00 : f32
    %52 = vector.broadcast %cst_13 : f32 to vector<4x4xf32>
    %53 = arith.subf %52, %49 : vector<4x4xf32>
    %cst_14 = arith.constant 1.000000e+00 : f32
    %54 = vector.broadcast %cst_14 : f32 to vector<4x4xf32>
    %55 = arith.mulf %54, %53 : vector<4x4xf32>
    %56 = arith.mulf %55, %53 : vector<4x4xf32>
    %57 = arith.mulf %51, %56 : vector<4x4xf32>
    %58 = arith.mulf %57, %39 : vector<4x4xf32>
    %c0_15 = arith.constant 0 : index
    %c0_16 = arith.constant 0 : index
    %59 = vector.load %arg6[%c0_15, %c0_16] : memref<4x4xf32, #tpu.memory_space<vmem>>, vector<4x4xf32>
    %60 = arith.addf %59, %58 : vector<4x4xf32>
    %c0_17 = arith.constant 0 : index
    %c0_18 = arith.constant 0 : index
    %61 = vector.load %arg6[%c0_17, %c0_18] : memref<4x4xf32, #tpu.memory_space<vmem>>, vector<4x4xf32>
    tpu.vector_store %arg6[%c0_17, %c0_18], %60 {strides = array<i32>} : memref<4x4xf32, #tpu.memory_space<vmem>>, vector<4x4xf32>,
    %c0_i32_19 = arith.constant 0 : i32
    %62 = arith.cmpi eq, %arg1, %c0_i32_19 : i32
    %63 = arith.extui %62 : i1 to i32
    %c0_i32_20 = arith.constant 0 : i32
    %64 = arith.cmpi ne, %63, %c0_i32_20 : i32
    scf.if %64 {
      %c0_21 = arith.constant 0 : index
      %c0_22 = arith.constant 0 : index
      %65 = vector.load %arg6[%c0_21, %c0_22] : memref<4x4xf32, #tpu.memory_space<vmem>>, vector<4x4xf32>
      %66 = vector.shape_cast %65 : vector<4x4xf32> to vector<1x4x4xf32>
      %cst_23 = arith.constant dense<0.000000e+00> : vector<1xf32>
      %67 = vector.multi_reduction <add>, %66, %cst_23 [1, 2] : vector<1x4x4xf32> to vector<1xf32>
      %68 = vector.shape_cast %67 : vector<1xf32> to vector<1x1x1xf32>
      %69 = vector.extract %68[0, 0, 0] : f32 from vector<1x1x1xf32>
      %70 = vector.broadcast %69 : f32 to vector<1x1x1xf32>
      %c0_24 = arith.constant 0 : index
      %c0_25 = arith.constant 0 : index
      %c0_26 = arith.constant 0 : index
      %71 = vector.load %arg5[%c0_24, %c0_25, %c0_26] : memref<1x1x1xf32, #tpu.memory_space<vmem>>, vector<1x1x1xf32>
      tpu.vector_store %arg5[%c0_24, %c0_25, %c0_26], %70 {strides = array<i32>} : memref<1x1x1xf32, #tpu.memory_space<vmem>>, vector<1x1x1xf32>,
    } else {
    }
    return
  }
  func.func @transform_0(%arg0: i32, %arg1: i32) -> (i32, i32) {
    %c1_i32 = arith.constant 1 : i32
    %0 = arith.muli %arg0, %c1_i32 : i32
    %1 = arith.addi %0, %arg1 : i32
    %c0_i32 = arith.constant 0 : i32
    %2 = arith.minsi %1, %c0_i32 : i32
    %c0_i32_0 = arith.constant 0 : i32
    %c0_i32_1 = arith.constant 0 : i32
    return %c0_i32_0, %2 : i32, i32
  }
  func.func @transform_1(%arg0: i32, %arg1: i32) -> (i32, i32) {
    %c1_i32 = arith.constant 1 : i32
    %0 = arith.muli %arg0, %c1_i32 : i32
    %1 = arith.addi %0, %arg1 : i32
    %c0_i32 = arith.constant 0 : i32
    %2 = arith.minsi %1, %c0_i32 : i32
    %c0_i32_0 = arith.constant 0 : i32
    %c0_i32_1 = arith.constant 0 : i32
    return %c0_i32_0, %2 : i32, i32
  }
  func.func @transform_2(%arg0: i32, %arg1: i32) -> (i32, i32) {
    %c0_i32 = arith.constant 0 : i32
    %c0_i32_0 = arith.constant 0 : i32
    %c0_i32_1 = arith.constant 0 : i32
    return %c0_i32, %c0_i32_0 : i32, i32
  }
  func.func @transform_3(%arg0: i32, %arg1: i32) -> (i32, i32, i32) {
    %c0_i32 = arith.constant 0 : i32
    %c0_i32_0 = arith.constant 0 : i32
    %c0_i32_1 = arith.constant 0 : i32
    return %arg0, %c0_i32, %c0_i32_0 : i32, i32, i32
  }
}

</mosaic_0001>

<bundles_post_ra>
// kernel: tpu_custom_call.1
= control target key start
LH: loop header
LB: loop body
LE: loop exit
PB: predicated region body
PF: predicated region fallthrough
CT: control target
= control target key end

     0   :  { %vm73_vm0 = vcmask 27648   ;;  %v204_v1 = vmov 0   ;;  %s242_s0 = inlined_call_operand.vmem [shape: f32[8,4], index: 0, kind: input, shape index: {}]   ;;  %s243_s1 = inlined_call_operand.vmem [shape: s32[4,4], index: 1, kind: input, shape index: {}]   ;;  %s244_s2 = inlined_call_operand.vmem [shape: f32[8,1], index: 2, kind: input, shape index: {}]   ;;  %s245_s3 = inlined_call_operand.hbm [shape: f32[1,1,1], index: 3, kind: output, shape index: {}]  }
   0x1   :  { %v77_v0 = vld [vmem:[%s244_s2] sm:$0xff]  ;;  %175 = vset.pattern.permute.xlu0 %v204_v1 }
   0x2   :  { %8 = vsyncpa [#allocation4], 0  ;;  %90 = vperm.xlu0 %175, %v77_v0   ;;  %v205_v2 = vmov 0.0   ;;  %v75_v3 = vld [vmem:[%s242_s0] sm:$0xff]  ;;  %s206_s0 = smov [#allocation3]   ;;  %vm142_vm3 = vcmask 0  }
   0x3   :  { %74 = vst.msk [vmem:[#allocation2] sm:$0xf] %vm73_vm0, %v205_v2  ;;  %v78_v4 = vrot.slane %v75_v3, 4  ;;  %v76_v15 = vld [vmem:[%s243_s1] sm:$0xf]  ;;  %s150_s1 = sshll.u32 %s206_s0, 4  ;;  %s151_s1 = int_to_ptr.vmem [resolvable:$true] %s150_s1 }
   0x4   :  { %vm85_vm1 = vcmp.eq.s32.totalorder %v76_v15, 0  ;;  %vm94_vm2 = vcmp.eq.s32.totalorder %v76_v15, 1  ;;  %s182_s18 = scalar_lea.vmem %s151_s1, 16  ;;  %s186_s19 = scalar_lea.vmem %s151_s1, 32 }
   0x5   :  { %v79_v5 = vmax.f32 %v75_v3, %v78_v4  ;;  %v87_v21 = vsel %vm85_vm1, %v75_v3, 0.0  ;;  %p183_p0 = scmp.ne.s32.totalorder %s151_s1, %s182_s18  ;;  %p187_p1 = scmp.lt.s32.totalorder %s151_s1, %s151_s1 }
   0x6   :  { %v102_v24 = vsel %vm94_vm2, %v78_v4, %v87_v21  ;;  %p188_p2 = scmp.lt.s32.totalorder %s186_s19, %s182_s18 }
   0x7   :  { %v80_v6 = vsub.f32 %v75_v3, %v79_v5  ;;  %v106_v27 = vsub.f32 %v102_v24, %v79_v5 }
   0x8   :  { %p189_p3 = por %p188_p2, %p187_p1 }
   0x9   :  { %v81_v7 = vmul.f32 1.442695, %v80_v6 }
   0xa   :  { %v123_v36 = vld [vmem:[#allocation2] sm:$0xf]  ;;  %p190_p4 = pnand %p189_p3, %p183_p0 }
   0xb   :  { %176 = vpow2.f32 %v81_v7 }
  0x18   :  { %v177_v8 = vpop.eup %176 }
  0x19   :  { %v83_v9 = vrot.slane %v177_v8, 4  ;;  %v86_v18 = vsel %vm85_vm1, %v177_v8, 0.0 }
  0x1b   :  { %v84_v10 = vadd.f32 %v177_v8, %v83_v9  ;;  %v98_v20 = vsel %vm94_vm2, %v83_v9, %v86_v18 }
  0x1d   :  { %178 = vrcp.f32 %v84_v10 }
  0x1e   :  { %180 = vlog2.f32 %v84_v10 }
  0x2a   :  { %v179_v11 = vpop.eup %178 }
  0x2b   :  { %v111_v12 = vmul.f32 %v179_v11, %v84_v10  ;;  %v181_v23 = vpop.eup %180 }
  0x2c   :  { %v108_v28 = vmul.f32 0.6931472, %v181_v23 }
  0x2d   :  { %v112_v13 = vsub.f32 2.0, %v111_v12 }
  0x2e   :  { %v109_v33 = vsub.f32 %v106_v27, %v108_v28 }
  0x2f   :  { %v113_v14 = vmul.f32 %v179_v11, %v112_v13 }
  0x31   :  { %v114_v16 = vmul.f32 %v113_v14, %v84_v10 }
  0x33   :  { %v115_v17 = vsub.f32 2.0, %v114_v16 }
  0x35   :  { %v116_v19 = vmul.f32 %v115_v17, %v113_v14 }
  0x37   :  { %v117_v22 = vmul.f32 %v116_v19, %v98_v20 }
  0x39   :  { %v119_v25 = vsub.f32 1.0, %v117_v22 }
  0x3b   :  { %v120_v31 = vmul.f32 %v119_v25, %v119_v25 }
  0x7d   :  { %v91_v26 = vpop.permute.xlu0 %90 }
  0x7e   :  { %v93_v29 = vsel %vm85_vm1, %v91_v26, 0.0  ;;  %v103_v30 = vrot.slane %v91_v26, 4 }
  0x80   :  { %v105_v32 = vsel %vm94_vm2, %v103_v30, %v93_v29 }
  0x81   :  { %v118_v34 = vsub.f32 0.0, %v105_v32 }
  0x83   :  { %v121_v35 = vmul.f32 %v120_v31, %v118_v34 }
  0x85   :  { %v122_v37 = vmul.f32 %v121_v35, %v109_v33 }
  0x87   :  { %v124_v38 = vadd.f32 %v123_v36, %v122_v37 }
  0x89   :  { %126 = vst.msk [vmem:[#allocation2] sm:$0xf] %vm73_vm0, %v124_v38 }
  0x90   :  { %v130_v39 = vld [vmem:[#allocation2] sm:$0xf] }
  0x91   :  { %v131_v40 = vsel %vm73_vm0, %v130_v39, 0.0 }
  0x92   :  { %132 = vadd.xlane.f32.xlu0 %v131_v40 }
 0x11b   :  { %v133_v41 = vpop.xlane.xlu0 %132 }
 0x11c   :  { %v134_v42 = vrot.slane %v133_v41, 4 }
 0x11e   :  { %v135_v43 = vadd.f32 %v134_v42, %v133_v41 }
 0x120   :  { %v136_v44 = vrot.slane %v135_v43, 2 }
 0x122   :  { %v137_v45 = vadd.f32 %v136_v44, %v135_v43 }
 0x124   :  { %v138_v46 = vrot.slane %v137_v45, 1 }
 0x126   :  { %v139_v47 = vadd.f32 %v138_v46, %v137_v45 }
 0x128   :  { %170 = vpush %v139_v47 }
 0x159   :  { %s171_s17 = spop %170 }
 0x15a   :  { %v141_v48 = vstv %s171_s17 }
 0x15b   :  { %143 = vst.msk [vmem:[#allocation3] sm:$0x1] %vm142_vm3, %v141_v48 }
 0x15c   :  { %193 = shalt.err (!%p190_p4)
}
 0x15d   :  { %153 = dma.vmem_to_hbm [thread:$0]  %s151_s1, 16, %s245_s3, [#allocation4]  }
 0x15e   :  { %202 = dma.done.wait [#allocation4], 16  }
 0x15f   :  { %203 = vsyncadd [#allocation4], 4294967280 }
 0x160   :  { %157 = vsyncpa [#allocation4], 1 }

</bundles_post_ra>
